<compile_context>
chip_gen: v7x
topology: tpu7x:2x2x1
jax: 0.10.0
libtpu: 0.0.40
codegen_flags: <defaults>
</compile_context>

<pallas_src>
import functools

import jax
import jax.numpy as jnp
from jax.experimental import pallas as pl
from jax.experimental.pallas import tpu as pltpu


def _disc2_kernel(z_ref, w1_ref, b1_ref, w2_ref, b2_ref, o_ref):
    # z_ref : (TR, Z)   f32  input rows (unpadded feature dim)
    # w1_ref: (KP, H)   f32  first-layer weight, zero-padded rows Z..KP-1
    # b1_ref: (1, H)    f32  first-layer bias
    # w2_ref: (1, H)    f32  second-layer weight (transposed to a row)
    # b2_ref: (1, 1)    f32  second-layer bias
    # o_ref : (TR, 1)        sigmoid output
    z = z_ref[...]
    tr, zdim = z.shape
    kp = w1_ref.shape[0]

    # Pad the contraction dim to KP lanes in VMEM (zero lanes hit zero weight
    # rows -> no effect).  This never touches HBM.
    if kp > zdim:
        z = jnp.concatenate(
            [z, jnp.zeros((tr, kp - zdim), dtype=z.dtype)], axis=-1)

    # Layer 1: Linear(z_dim, 512) + ReLU.  f32 MXU matmul, f32 accumulate.
    h = jnp.dot(z, w1_ref[...], preferred_element_type=jnp.float32)
    h = jnp.maximum(h + b1_ref[...], 0.0)

    # Layer 2: Linear(512, 1) as VPU multiply + cross-lane reduction (an N=1
    # MXU matmul would waste >99% of the array), then Sigmoid on the EUP.
    logit = jnp.sum(h * w2_ref[...], axis=-1, keepdims=True) + b2_ref[...]
    o_ref[...] = jax.nn.sigmoid(logit).astype(o_ref.dtype)


@functools.partial(jax.jit, static_argnames=("row_tile",))
def discriminator2_forward(z, w1, b1, w2, b2, *, row_tile=1024):
    """sigmoid(relu(z @ W1 + b1) @ W2 + b2), fused in one Pallas kernel.

    z: (B, Z) f32, w1: (Z, H), b1: (H,), w2: (H, 1), b2: (1,)
    """
    B, Z = z.shape
    H = w1.shape[1]

    # Only the tiny weight gets padded (KP x H f32, a couple hundred KiB, one
    # pass); z itself is streamed unpadded.
    KP = max(128, pl.cdiv(Z, 128) * 128)
    w1_p = jnp.zeros((KP, H), dtype=jnp.float32).at[:Z, :].set(
        w1.astype(jnp.float32))
    b1_2 = b1.reshape(1, H).astype(jnp.float32)
    w2_2 = w2.reshape(1, H).astype(jnp.float32)      # (H, 1) -> row vector
    b2_2 = jnp.reshape(b2, (1, 1)).astype(jnp.float32)

    # Effective row tile: as large as possible (amortizes the ~0.35 us/step
    # grid overhead), 8-aligned, no larger than the batch, and small enough to
    # keep >= 2 grid steps on big batches so v7x megacore can shard the
    # "parallel" row axis.  The last block may be partial; its garbage rows
    # are never stored (output array is exactly (B, 1)).
    b8 = pl.cdiv(B, 8) * 8
    min_steps = 2 if b8 >= 1024 else 1
    tile = min(row_tile, pl.cdiv(pl.cdiv(b8, min_steps), 8) * 8)
    tile = max(tile, 8)
    grid = (pl.cdiv(B, tile),)

    out = pl.pallas_call(
        _disc2_kernel,
        out_shape=jax.ShapeDtypeStruct((B, 1), z.dtype),
        grid_spec=pltpu.PrefetchScalarGridSpec(
            num_scalar_prefetch=0,
            grid=grid,
            in_specs=[
                pl.BlockSpec((tile, Z), lambda i: (i, 0)),   # z rows (unpadded)
                pl.BlockSpec((KP, H), lambda i: (0, 0)),     # W1 (zero-padded K)
                pl.BlockSpec((1, H), lambda i: (0, 0)),      # b1
                pl.BlockSpec((1, H), lambda i: (0, 0)),      # W2^T
                pl.BlockSpec((1, 1), lambda i: (0, 0)),      # b2
            ],
            out_specs=pl.BlockSpec((tile, 1), lambda i: (i, 0)),
        ),
        compiler_params=pltpu.CompilerParams(
            dimension_semantics=("parallel",),      # megacore-shards on v7x
            vmem_limit_bytes=32 * 1024 * 1024,
        ),
    )(z, w1_p, b1_2, w2_2, b2_2)

    return out


def _reference_f32(z, w1, b1, w2, b2):
    h = jnp.maximum(z @ w1 + b1, 0.0)
    return jax.nn.sigmoid(h @ w2 + b2)


if __name__ == "__main__":
    B, Z, H = 8, 10, 512   # z_dim=10, hidden=512 as in Discriminator2

    key = jax.random.PRNGKey(0)
    kz, k1, k2 = jax.random.split(key, 3)

    z = jax.random.normal(kz, (B, Z), dtype=jnp.float32)

    # kaiming_init: kaiming_normal_ (gain=sqrt(2), fan_in), biases = 0.
    w1 = jax.random.normal(k1, (Z, H), dtype=jnp.float32) * jnp.sqrt(2.0 / Z)
    b1 = jnp.zeros((H,), dtype=jnp.float32)
    w2 = jax.random.normal(k2, (H, 1), dtype=jnp.float32) * jnp.sqrt(2.0 / H)
    b2 = jnp.zeros((1,), dtype=jnp.float32)

    out = discriminator2_forward(z, w1, b1, w2, b2)
    out = jax.block_until_ready(out)

    ref = _reference_f32(z, w1, b1, w2, b2)

    assert out.shape == (B, 1)
    assert jnp.allclose(out, ref, atol=5e-3, rtol=0.0), float(
        jnp.max(jnp.abs(out - ref)))

    print("KERNEL_OK")
</pallas_src>

<mosaic_0001>
module attributes {stable_mosaic.version = 11 : i64} {
  func.func @_disc2_kernel(%arg0: i32, %arg1: memref<8x10xf32, #tpu.memory_space<vmem>>, %arg2: memref<128x512xf32, #tpu.memory_space<vmem>>, %arg3: memref<1x512xf32, #tpu.memory_space<vmem>>, %arg4: memref<1x512xf32, #tpu.memory_space<vmem>>, %arg5: memref<1x1xf32, #tpu.memory_space<vmem>>, %arg6: memref<8x1xf32, #tpu.memory_space<vmem>>) attributes {dimension_semantics = [#tpu.dimension_semantics<parallel>], iteration_bounds = array<i64: 1>, scalar_prefetch = 0 : i64, scratch_operands = 0 : i64, tpu.core_type = #tpu.core_type<tc>, window_params = [{transform_indices = @transform_0, window_bounds = array<i64: 8, 10>}, {pipeline_mode = #tpu.pipeline_mode<synchronous>, transform_indices = @transform_1, window_bounds = array<i64: 128, 512>}, {pipeline_mode = #tpu.pipeline_mode<synchronous>, transform_indices = @transform_2, window_bounds = array<i64: 1, 512>}, {pipeline_mode = #tpu.pipeline_mode<synchronous>, transform_indices = @transform_3, window_bounds = array<i64: 1, 512>}, {pipeline_mode = #tpu.pipeline_mode<synchronous>, transform_indices = @transform_4, window_bounds = array<i64: 1, 1>}, {transform_indices = @transform_5, window_bounds = array<i64: 8, 1>}]} {
    %c0 = arith.constant 0 : index
    %c0_0 = arith.constant 0 : index
    %0 = vector.load %arg1[%c0, %c0_0] : memref<8x10xf32, #tpu.memory_space<vmem>>, vector<8x10xf32>
    %cst = arith.constant 0.000000e+00 : f32
    %1 = vector.broadcast %cst : f32 to vector<8x118xf32>
    %2 = tpu.concatenate %0, %1 in 1 : vector<8x10xf32>, vector<8x118xf32> -> vector<8x128xf32>
    %c0_1 = arith.constant 0 : index
    %c0_2 = arith.constant 0 : index
    %3 = vector.load %arg2[%c0_1, %c0_2] : memref<128x512xf32, #tpu.memory_space<vmem>>, vector<128x512xf32>
    %cst_3 = arith.constant dense<0.000000e+00> : vector<8x512xf32>
    %4 = tpu.matmul %2, %3, %cst_3 {dimension_numbers = #tpu.dot_dimension_numbers<[1], [0], [0], [1], [0, 0, 1, 1], [], []>} : vector<8x128xf32>, vector<128x512xf32>, vector<8x512xf32> -> vector<8x512xf32>
    %c0_4 = arith.constant 0 : index
    %c0_5 = arith.constant 0 : index
    %5 = vector.load %arg3[%c0_4, %c0_5] : memref<1x512xf32, #tpu.memory_space<vmem>>, vector<1x512xf32>
    %6 = vector.broadcast %5 : vector<1x512xf32> to vector<8x512xf32>
    %7 = arith.addf %4, %6 : vector<8x512xf32>
    %cst_6 = arith.constant 0.000000e+00 : f32
    %8 = vector.broadcast %cst_6 : f32 to vector<8x512xf32>
    %9 = arith.maximumf %7, %8 : vector<8x512xf32>
    %c0_7 = arith.constant 0 : index
    %c0_8 = arith.constant 0 : index
    %10 = vector.load %arg4[%c0_7, %c0_8] : memref<1x512xf32, #tpu.memory_space<vmem>>, vector<1x512xf32>
    %11 = vector.broadcast %10 : vector<1x512xf32> to vector<8x512xf32>
    %12 = arith.mulf %9, %11 : vector<8x512xf32>
    %cst_9 = arith.constant dense<0.000000e+00> : vector<8xf32>
    %13 = vector.multi_reduction <add>, %12, %cst_9 [1] : vector<8x512xf32> to vector<8xf32>
    %14 = vector.shape_cast %13 : vector<8xf32> to vector<8x1xf32>
    %c0_10 = arith.constant 0 : index
    %c0_11 = arith.constant 0 : index
    %15 = vector.load %arg5[%c0_10, %c0_11] : memref<1x1xf32, #tpu.memory_space<vmem>>, vector<1x1xf32>
    %16 = vector.broadcast %15 : vector<1x1xf32> to vector<8x1xf32>
    %17 = arith.addf %14, %16 : vector<8x1xf32>
    %18 = arith.negf %17 : vector<8x1xf32>
    %19 = math.exp %18 : vector<8x1xf32>
    %cst_12 = arith.constant 1.000000e+00 : f32
    %20 = vector.broadcast %cst_12 : f32 to vector<8x1xf32>
    %21 = arith.addf %20, %19 : vector<8x1xf32>
    %22 = arith.divf %20, %21 : vector<8x1xf32>
    %c0_13 = arith.constant 0 : index
    %c0_14 = arith.constant 0 : index
    %23 = vector.load %arg6[%c0_13, %c0_14] : memref<8x1xf32, #tpu.memory_space<vmem>>, vector<8x1xf32>
    tpu.vector_store %arg6[%c0_13, %c0_14], %22 {strides = array<i32>} : memref<8x1xf32, #tpu.memory_space<vmem>>, vector<8x1xf32>,
    return
  }
  func.func @transform_0(%arg0: i32) -> (i32, i32) {
    %c0_i32 = arith.constant 0 : i32
    %c0_i32_0 = arith.constant 0 : i32
    return %arg0, %c0_i32 : i32, i32
  }
  func.func @transform_1(%arg0: i32) -> (i32, i32) {
    %c0_i32 = arith.constant 0 : i32
    %c0_i32_0 = arith.constant 0 : i32
    %c0_i32_1 = arith.constant 0 : i32
    return %c0_i32, %c0_i32_0 : i32, i32
  }
  func.func @transform_2(%arg0: i32) -> (i32, i32) {
    %c0_i32 = arith.constant 0 : i32
    %c0_i32_0 = arith.constant 0 : i32
    %c0_i32_1 = arith.constant 0 : i32
    return %c0_i32, %c0_i32_0 : i32, i32
  }
  func.func @transform_3(%arg0: i32) -> (i32, i32) {
    %c0_i32 = arith.constant 0 : i32
    %c0_i32_0 = arith.constant 0 : i32
    %c0_i32_1 = arith.constant 0 : i32
    return %c0_i32, %c0_i32_0 : i32, i32
  }
  func.func @transform_4(%arg0: i32) -> (i32, i32) {
    %c0_i32 = arith.constant 0 : i32
    %c0_i32_0 = arith.constant 0 : i32
    %c0_i32_1 = arith.constant 0 : i32
    return %c0_i32, %c0_i32_0 : i32, i32
  }
  func.func @transform_5(%arg0: i32) -> (i32, i32) {
    %c0_i32 = arith.constant 0 : i32
    %c0_i32_0 = arith.constant 0 : i32
    return %arg0, %c0_i32 : i32, i32
  }
}

</mosaic_0001>

<bundles_post_ra>
// kernel: discriminator2_forward.1
= control target key start
LH: loop header
LB: loop body
LE: loop exit
PB: predicated region body
PF: predicated region fallthrough
CT: control target
= control target key end

     0   :  { %v381_v3 = vmov 0.0   ;;  %vm23_vm0 = vcmask 80896   ;;  %vm302_vm1 = vcmask 7168   ;;  %s619_s1 = inlined_call_operand.vmem [shape: f32[128,512], index: 1, kind: input, shape index: {}]   ;;  %s620_s0 = inlined_call_operand.vmem [shape: f32[8,10], index: 0, kind: input, shape index: {}]   ;;  %s621_s4 = inlined_call_operand.<no memory space> [shape: f32[1,1], index: 4, kind: input, shape index: {}]   ;;  %s622_s2 = inlined_call_operand.vmem [shape: f32[1,512], index: 2, kind: input, shape index: {}]   ;;  %s623_s3 = inlined_call_operand.vmem [shape: f32[1,512], index: 3, kind: input, shape index: {}]   ;;  %s624_s5 = inlined_call_operand.vmem [shape: f32[8,1], index: 5, kind: output, shape index: {}]  }
   0x1   :  { %v26_v0 = vld [vmem:[%s619_s1 + $0x8] sm:$0xff]  ;;  %v25_v2 = vld [vmem:[%s619_s1] sm:$0xff]  ;;  %175 = vmatprep.mubr.f32.mxu0 %v381_v3  ;;  %246 = vmatprep.mubr.f32.mxu1 %v381_v3  ;;  %v28_v6 = vld [vmem:[%s619_s1 + $0x18] sm:$0xff] }
   0x2   :  { %v30_v1 = vld [vmem:[%s619_s1 + $0x28] sm:$0xff]  ;;  %v29_v5 = vld [vmem:[%s619_s1 + $0x20] sm:$0xff]  ;;  %v32_v7 = vld [vmem:[%s619_s1 + $0x38] sm:$0xff] }
   0x3   :  { %v312_v4 = vpack.c.bf16 %v30_v1, %v26_v0  ;;  %v314_v8 = vpack.c.bf16 %v29_v5, %v25_v2  ;;  %v344_v9 = vpack.c.bf16 %v32_v7, %v28_v6  ;;  %v27_v10 = vld [vmem:[%s619_s1 + $0x10] sm:$0xff]  ;;  %v34_v12 = vld [vmem:[%s619_s1 + $0x48] sm:$0xff]  ;;  %v33_v15 = vld [vmem:[%s619_s1 + $0x40] sm:$0xff] }
   0x4   :  { %v31_v11 = vld [vmem:[%s619_s1 + $0x30] sm:$0xff]  ;;  %v38_v14 = vld [vmem:[%s619_s1 + $0x68] sm:$0xff]  ;;  %v37_v16 = vld [vmem:[%s619_s1 + $0x60] sm:$0xff] }
   0x5   :  { %313 = vmatprep.subr.bf16.mxu0 %v312_v4  ;;  %v346_v13 = vpack.c.bf16 %v31_v11, %v27_v10  ;;  %345 = vmatprep.subr.bf16.mxu1 %v344_v9  ;;  %v316_v17 = vpack.c.bf16 %v38_v14, %v34_v12  ;;  %v318_v18 = vpack.c.bf16 %v37_v16, %v33_v15  ;;  %v36_v19 = vld [vmem:[%s619_s1 + $0x58] sm:$0xff]  ;;  %v35_v21 = vld [vmem:[%s619_s1 + $0x50] sm:$0xff]  ;;  %v42_v24 = vld [vmem:[%s619_s1 + $0x88] sm:$0xff] }
   0x6   :  { %315 = vmatpush1.bf16.msra.mxu0 %v314_v8  ;;  %v40_v20 = vld [vmem:[%s619_s1 + $0x78] sm:$0xff]  ;;  %v39_v23 = vld [vmem:[%s619_s1 + $0x70] sm:$0xff]  ;;  %v46_v25 = vld [vmem:[%s619_s1 + $0xa8] sm:$0xff] }
   0x7   :  { %347 = vmatpush1.bf16.msra.mxu1 %v346_v13  ;;  %v348_v22 = vpack.c.bf16 %v40_v20, %v36_v19  ;;  %317 = vmatprep.subr.bf16.mxu0 %v316_v17  ;;  %v350_v26 = vpack.c.bf16 %v39_v23, %v35_v21  ;;  %v320_v27 = vpack.c.bf16 %v46_v25, %v42_v24  ;;  %v41_v28 = vld [vmem:[%s619_s1 + $0x80] sm:$0xff]  ;;  %v44_v30 = vld [vmem:[%s619_s1 + $0x98] sm:$0xff]  ;;  %v43_v32 = vld [vmem:[%s619_s1 + $0x90] sm:$0xff] }
   0x8   :  { %v45_v29 = vld [vmem:[%s619_s1 + $0xa0] sm:$0xff]  ;;  %v48_v31 = vld [vmem:[%s619_s1 + $0xb8] sm:$0xff]  ;;  %v47_v33 = vld [vmem:[%s619_s1 + $0xb0] sm:$0xff] }
   0x9   :  { %349 = vmatprep.subr.bf16.mxu1 %v348_v22  ;;  %v322_v34 = vpack.c.bf16 %v45_v29, %v41_v28  ;;  %v352_v35 = vpack.c.bf16 %v48_v31, %v44_v30  ;;  %v50_v36 = vld [vmem:[%s619_s1 + $0xc8] sm:$0xff]  ;;  %v49_v38 = vld [vmem:[%s619_s1 + $0xc0] sm:$0xff]  ;;  %v354_v39 = vpack.c.bf16 %v47_v33, %v43_v32  ;;  %v52_v42 = vld [vmem:[%s619_s1 + $0xd8] sm:$0xff] }
   0xa   :  { %319 = vmatpush1.bf16.msra.mxu0 %v318_v18  ;;  %v54_v37 = vld [vmem:[%s619_s1 + $0xe8] sm:$0xff]  ;;  %v53_v41 = vld [vmem:[%s619_s1 + $0xe0] sm:$0xff]  ;;  %v56_v43 = vld [vmem:[%s619_s1 + $0xf8] sm:$0xff] }
   0xb   :  { %351 = vmatpush1.bf16.msra.mxu1 %v350_v26  ;;  %321 = vmatprep.subr.bf16.mxu0 %v320_v27  ;;  %v324_v40 = vpack.c.bf16 %v54_v37, %v50_v36  ;;  %v356_v44 = vpack.c.bf16 %v56_v43, %v52_v42  ;;  %v51_v45 = vld [vmem:[%s619_s1 + $0xd0] sm:$0xff]  ;;  %v58_v47 = vld [vmem:[%s619_s1 + $0x108] sm:$0xff]  ;;  %v326_v49 = vpack.c.bf16 %v53_v41, %v49_v38  ;;  %v60_v50 = vld [vmem:[%s619_s1 + $0x118] sm:$0xff] }
   0xc   :  { %353 = vmatprep.subr.bf16.mxu1 %v352_v35  ;;  %v55_v46 = vld [vmem:[%s619_s1 + $0xf0] sm:$0xff]  ;;  %v62_v48 = vld [vmem:[%s619_s1 + $0x128] sm:$0xff]  ;;  %v64_v51 = vld [vmem:[%s619_s1 + $0x138] sm:$0xff]  ;;  %v91_v35 = vlaneseq }
   0xd   :  { %v358_v52 = vpack.c.bf16 %v55_v46, %v51_v45  ;;  %v328_v53 = vpack.c.bf16 %v62_v48, %v58_v47  ;;  %v57_v54 = vld [vmem:[%s619_s1 + $0x100] sm:$0xff]  ;;  %v59_v56 = vld [vmem:[%s619_s1 + $0x110] sm:$0xff]  ;;  %v360_v57 = vpack.c.bf16 %v64_v51, %v60_v50  ;;  %v66_v59 = vld [vmem:[%s619_s1 + $0x148] sm:$0xff] }
   0xe   :  { %323 = vmatpush1.bf16.msra.mxu0 %v322_v34  ;;  %v61_v55 = vld [vmem:[%s619_s1 + $0x120] sm:$0xff]  ;;  %v63_v58 = vld [vmem:[%s619_s1 + $0x130] sm:$0xff]  ;;  %v70_v60 = vld [vmem:[%s619_s1 + $0x168] sm:$0xff]  ;;  %v10_v34 = vstv %s621_s4  ;;  %v92_v36 = vshrl.u32 %v91_v35, 7 }
   0xf   :  { %355 = vmatpush1.bf16.msra.mxu1 %v354_v39  ;;  %325 = vmatprep.subr.bf16.mxu0 %v324_v40  ;;  %v68_v61 = vld [vmem:[%s619_s1 + $0x158] sm:$0xff]  ;;  %v330_v63 = vpack.c.bf16 %v61_v55, %v57_v54  ;;  %v362_v0 = vpack.c.bf16 %v63_v58, %v59_v56  ;;  %v332_v1 = vpack.c.bf16 %v70_v60, %v66_v59  ;;  %v65_v2 = vld [vmem:[%s619_s1 + $0x140] sm:$0xff]  ;;  %v67_v4 = vld [vmem:[%s619_s1 + $0x150] sm:$0xff] }
  0x10   :  { %357 = vmatprep.subr.bf16.mxu1 %v356_v44  ;;  %v72_v62 = vld [vmem:[%s619_s1 + $0x178] sm:$0xff]  ;;  %v69_v3 = vld [vmem:[%s619_s1 + $0x160] sm:$0xff]  ;;  %v71_v6 = vld [vmem:[%s619_s1 + $0x170] sm:$0xff]  ;;  %11 = vst [vmem:[#allocation2] sm:$0x1] %v10_v34  ;;  %v93_v37 = vsub.s32 0, %v92_v36 }
  0x11   :  { %v364_v5 = vpack.c.bf16 %v72_v62, %v68_v61  ;;  %v74_v7 = vld [vmem:[%s619_s1 + $0x188] sm:$0xff]  ;;  %v76_v9 = vld [vmem:[%s619_s1 + $0x198] sm:$0xff]  ;;  %v334_v11 = vpack.c.bf16 %v69_v3, %v65_v2  ;;  %v366_v12 = vpack.c.bf16 %v71_v6, %v67_v4  ;;  %v73_v14 = vld [vmem:[%s619_s1 + $0x180] sm:$0xff]  ;;  %v97_v39 = vsub.s32 1, %v92_v36 }
  0x12   :  { %327 = vmatpush1.bf16.msra.mxu0 %v326_v49  ;;  %v78_v8 = vld [vmem:[%s619_s1 + $0x1a8] sm:$0xff]  ;;  %v80_v10 = vld [vmem:[%s619_s1 + $0x1b8] sm:$0xff]  ;;  %v77_v15 = vld [vmem:[%s619_s1 + $0x1a0] sm:$0xff]  ;;  %v101_v40 = vsub.s32 2, %v92_v36  ;;  %v105_v41 = vsub.s32 3, %v92_v36 }
  0x13   :  { %359 = vmatpush1.bf16.msra.mxu1 %v358_v52  ;;  %329 = vmatprep.subr.bf16.mxu0 %v328_v53  ;;  %v336_v13 = vpack.c.bf16 %v78_v8, %v74_v7  ;;  %v75_v16 = vld [vmem:[%s619_s1 + $0x190] sm:$0xff]  ;;  %v368_v17 = vpack.c.bf16 %v80_v10, %v76_v9  ;;  %v82_v19 = vld [vmem:[%s619_s1 + $0x1c8] sm:$0xff]  ;;  %v84_v21 = vld [vmem:[%s619_s1 + $0x1d8] sm:$0xff]  ;;  %v338_v23 = vpack.c.bf16 %v77_v15, %v73_v14 }
  0x14   :  { %361 = vmatprep.subr.bf16.mxu1 %v360_v57  ;;  %v79_v18 = vld [vmem:[%s619_s1 + $0x1b0] sm:$0xff]  ;;  %v86_v20 = vld [vmem:[%s619_s1 + $0x1e8] sm:$0xff]  ;;  %v88_v22 = vld [vmem:[%s619_s1 + $0x1f8] sm:$0xff] }
  0x15   :  { %v370_v24 = vpack.c.bf16 %v79_v18, %v75_v16  ;;  %v340_v25 = vpack.c.bf16 %v86_v20, %v82_v19  ;;  %v81_v26 = vld [vmem:[%s619_s1 + $0x1c0] sm:$0xff]  ;;  %v372_v28 = vpack.c.bf16 %v88_v22, %v84_v21  ;;  %v83_v29 = vld [vmem:[%s619_s1 + $0x1d0] sm:$0xff] }
  0x16   :  { %331 = vmatpush1.bf16.msra.mxu0 %v330_v63  ;;  %v85_v27 = vld [vmem:[%s619_s1 + $0x1e0] sm:$0xff]  ;;  %v87_v30 = vld [vmem:[%s619_s1 + $0x1f0] sm:$0xff] }
  0x17   :  { %363 = vmatpush1.bf16.msra.mxu1 %v362_v0  ;;  %333 = vmatprep.subr.bf16.mxu0 %v332_v1  ;;  %v342_v31 = vpack.c.bf16 %v85_v27, %v81_v26  ;;  %v374_v32 = vpack.c.bf16 %v87_v30, %v83_v29  ;;  %v22_v33 = vld [vmem:[%s620_s0] sm:$0xff] }
  0x18   :  { %365 = vmatprep.subr.bf16.mxu1 %v364_v5  ;;  %v89_v38 = vld [vmem:[%s622_s2] sm:$0xf] }
  0x19   :  { %v94_v42 = vrot.slane %v89_v38, %v93_v37  ;;  %v257_v43 = vld [vmem:[%s623_s3] sm:$0xf]  ;;  %v98_v44 = vrot.slane %v89_v38, %v97_v39  ;;  %v102_v45 = vrot.slane %v89_v38, %v101_v40  ;;  %v106_v46 = vrot.slane %v89_v38, %v105_v41 }
  0x1a   :  { %335 = vmatpush1.bf16.msra.mxu0 %v334_v11  ;;  %v262_v49 = vrot.slane %v257_v43, %v93_v37  ;;  %v266_v53 = vrot.slane %v257_v43, %v97_v39  ;;  %v270_v55 = vrot.slane %v257_v43, %v101_v40  ;;  %v274_v1 = vrot.slane %v257_v43, %v105_v41  ;;  %v310_v6 = vld [vmem:[#allocation2] ss:$0 sm:$0xff] }
  0x1b   :  { %367 = vmatpush1.bf16.msra.mxu1 %v366_v12  ;;  %337 = vmatprep.subr.bf16.mxu0 %v336_v13 }
  0x1c   :  { %369 = vmatprep.subr.bf16.mxu1 %v368_v17 }
  0x1e   :  { %339 = vmatpush1.bf16.msra.mxu0 %v338_v23 }
  0x1f   :  { %371 = vmatpush1.bf16.msra.mxu1 %v370_v24  ;;  %341 = vmatprep.subr.bf16.mxu0 %v340_v25 }
  0x20   :  { %373 = vmatprep.subr.bf16.mxu1 %v372_v28 }
  0x22   :  { %343 = vmatpush1.bf16.msra.mxu0 %v342_v31 }
  0x23   :  { %375 = vmatpush1.bf16.msra.mxu1 %v374_v32 }
  0x25   :  { %308 = vmatmul.mubr.msk.f32.vlgmr.msra.gmra.mrb[0].mxu0 %vm23_vm0, %v22_v33 }
  0x26   :  { %309 = vmatmul.mubr.msk.f32.vlgmr.msra.gmra.mrb[0].mxu1 %vm23_vm0, %v22_v33 }
  0xf8   :  { %v177_v47 = vpop.f32.mrb[0].mxu0 }
  0xf9   :  { %v178_v48 = vadd.f32 %v177_v47, %v94_v42  ;;  %v179_v50 = vpop.f32.mrb[1].mxu0  ;;  %v248_v51 = vpop.f32.mrb[0].mxu1 }
  0xfa   :  { %v180_v52 = vadd.f32 %v179_v50, %v98_v44  ;;  %v249_v54 = vadd.f32 %v248_v51, %v102_v45  ;;  %v250_v56 = vpop.f32.mrb[1].mxu1 }
  0xfb   :  { %v253_v57 = vmax.f32 %v178_v48, 0.0  ;;  %v251_v58 = vadd.f32 %v250_v56, %v106_v46 }
  0xfc   :  { %v254_v59 = vmax.f32 %v180_v52, 0.0  ;;  %v255_v60 = vmax.f32 %v249_v54, 0.0 }
  0xfd   :  { %v279_v61 = vmul.f32 %v262_v49, %v253_v57  ;;  %v256_v0 = vmax.f32 %v251_v58, 0.0 }
  0xfe   :  { %v280_v62 = vmul.f32 %v266_v53, %v254_v59  ;;  %v281_v63 = vmul.f32 %v270_v55, %v255_v60 }
  0xff   :  { %v282_v3 = vmul.f32 %v274_v1, %v256_v0 }
 0x100   :  { %v283_v2 = vadd.f32 %v280_v62, %v279_v61 }
 0x102   :  { %v284_v4 = vadd.f32 %v283_v2, %v281_v63 }
 0x104   :  { %v285_v5 = vadd.f32 %v284_v4, %v282_v3 }
 0x106   :  { %286 = vadd.xlane.f32.xlu0 %v285_v5 }
 0x193   :  { %v287_v7 = vpop.xlane.xlu0 %286 }
 0x194   :  { %v295_v8 = vadd.f32 %v310_v6, %v287_v7 }
 0x196   :  { %v311_v9 = vmul.f32 -1.442695, %v295_v8 }
 0x198   :  { %377 = vpow2.f32 %v311_v9 }
 0x1a2   :  { %v378_v10 = vpop.eup %377 }
 0x1a3   :  { %v299_v11 = vadd.f32 1.0, %v378_v10 }
 0x1a5   :  { %379 = vrcp.f32 %v299_v11 }
 0x1af   :  { %v380_v12 = vpop.eup %379 }
 0x1b0   :  { %303 = vst.msk [vmem:[%s624_s5] sm:$0xff] %vm302_vm1, %v380_v12 }

</bundles_post_ra>
